<compile_context>
chip_gen: v6e
topology: v6e:2x2x1
jax: 0.10.0
libtpu: 0.0.40
codegen_flags: <defaults>
</compile_context>

<pallas_src>
import functools
import math

import jax
import jax.numpy as jnp
from jax.experimental import pallas as pl
from jax.experimental.pallas import tpu as pltpu

_VMEM = pl.BlockSpec(memory_space=pltpu.MemorySpace.VMEM)


# ----------------------------------------------------------------------------
# Pallas kernel 1: fully fused VAE-with-flows imputation
#   encoder -> (mu, logvar) -> reparameterised z -> planar flows -> decoder
# All matmuls + flow bookkeeping happen in a single kernel; intermediates never
# leave VMEM/vregs.
# ----------------------------------------------------------------------------
def _vae_kernel(enc_in_ref, cond_ref, eps_ref,
                ew1_ref, eb1_ref, ewmu_ref, ebmu_ref, ewlv_ref, eblv_ref,
                fu_ref, fw_ref, fb_ref,
                dwz_ref, dwc_ref, db1_ref, dw2_ref, db2_ref,
                sample_ref, z_ref, mu_ref, lv_ref, ent_ref, ld_ref,
                *, Nflows):
    # encoder
    h = jnp.tanh(jnp.dot(enc_in_ref[...], ew1_ref[...],
                         preferred_element_type=jnp.float32) + eb1_ref[...])
    mu = jnp.dot(h, ewmu_ref[...], preferred_element_type=jnp.float32) + ebmu_ref[...]
    lv = jnp.dot(h, ewlv_ref[...], preferred_element_type=jnp.float32) + eblv_ref[...]

    # reparameterisation
    z = mu + jnp.exp(0.5 * lv) * eps_ref[...]
    B = z.shape[0]
    log_det = jnp.zeros((B, 1), jnp.float32)

    # planar flows (tiny elementwise / lane-reduce work, z stays resident in vregs)
    # TODO(synk): planar flows without the u-hat invertibility reparameterisation
    # (original VAEImputeFlows source unavailable); 1e-8 guards the log.
    for k in range(Nflows):
        u = fu_ref[k:k + 1, :]                                  # (1, Z)
        w = fw_ref[k:k + 1, :]                                  # (1, Z)
        b = fb_ref[k:k + 1, :]                                  # (1, 1)
        lin = jnp.sum(z * w, axis=-1, keepdims=True) + b        # (B, 1)
        tl = jnp.tanh(lin)
        z = z + u * tl
        wu = jnp.sum(w * u, axis=-1, keepdims=True)             # (1, 1)
        psi_u = (1.0 - tl * tl) * wu                            # (B, 1)
        log_det = log_det + jnp.log(jnp.abs(1.0 + psi_u) + 1e-8)

    ent = 0.5 * jnp.sum(lv + math.log(2.0 * math.pi) + 1.0, axis=-1, keepdims=True)

    # decoder (first-layer weights pre-split by input block: [z | trans_t0,env,med0])
    dh = jnp.tanh(jnp.dot(z, dwz_ref[...], preferred_element_type=jnp.float32)
                  + jnp.dot(cond_ref[...], dwc_ref[...], preferred_element_type=jnp.float32)
                  + db1_ref[...])
    sample = jnp.dot(dh, dw2_ref[...], preferred_element_type=jnp.float32) + db2_ref[...]

    sample_ref[...] = sample
    z_ref[...] = z
    mu_ref[...] = mu
    lv_ref[...] = lv
    ent_ref[...] = ent
    ld_ref[...] = log_det


def vae_impute(params, trans_t0, y0, m, env, med0, eps_z, Nflows):
    B = y0.shape[0]
    z_size = params['enc_wmu'].shape[1]
    N = params['dec_w2'].shape[1]

    enc_in = jnp.concatenate([trans_t0, y0, m, env, med0], axis=-1)
    cond = jnp.concatenate([trans_t0, env, med0], axis=-1)
    dwz = params['dec_w1'][:z_size]          # decoder rows for z
    dwc = params['dec_w1'][z_size:]          # decoder rows for [trans_t0, env, med0]
    fb = params['flow_b'][:, None]           # (Nflows, 1)

    outs = pl.pallas_call(
        functools.partial(_vae_kernel, Nflows=Nflows),
        out_shape=(jax.ShapeDtypeStruct((B, N), jnp.float32),       # sample0
                   jax.ShapeDtypeStruct((B, z_size), jnp.float32),  # z
                   jax.ShapeDtypeStruct((B, z_size), jnp.float32),  # mu0
                   jax.ShapeDtypeStruct((B, z_size), jnp.float32),  # logvar0
                   jax.ShapeDtypeStruct((B, 1), jnp.float32),       # prior entropy
                   jax.ShapeDtypeStruct((B, 1), jnp.float32)),      # log det
        in_specs=[_VMEM] * 17,
        out_specs=tuple([_VMEM] * 6),
    )(enc_in, cond, eps_z,
      params['enc_w1'], params['enc_b1'], params['enc_wmu'], params['enc_bmu'],
      params['enc_wlv'], params['enc_blv'],
      params['flow_u'], params['flow_w'], fb,
      dwz, dwc, params['dec_b1'], params['dec_w2'], params['dec_b2'])

    sample0, z, mu0, logvar0, ent, ld = outs
    return sample0, z, mu0, logvar0, ent[:, 0], ld[:, 0]


# ----------------------------------------------------------------------------
# Pallas kernel 2: full SDE (Euler–Maruyama) integration.
#   - one fused first-layer matmul for drift/sigma/gamma MLPs (weights concatenated
#     in the wrapper), one block-diagonal second-layer matmul
#   - loop-invariant context matmul hoisted out of the time loop
#   - one lane-dense packed store per step; time loop fully unrolled (static length)
# ----------------------------------------------------------------------------
def _sde_kernel(x0_ref, t0_ref, ctx_ref, wmat_ref, noise_ref,
                w1x_ref, w1t_ref, w1c_ref, b1_ref, w2_ref, b2_ref,
                pack_ref, *, length, dt, mean_T, std_T, N, P):
    x = x0_ref[...]                      # (B, N)
    t = t0_ref[...]                      # (B, 1)
    B = x.shape[0]
    s = jnp.ones((B, 1), jnp.float32)

    wmat = wmat_ref[...]                 # (N, N), pre-transposed: interaction = x @ wmat
    w1x = w1x_ref[...]                   # (N, H)
    w1t = w1t_ref[...]                   # (1, H)
    b1 = b1_ref[...]                     # (1, H)
    w2 = w2_ref[...]                     # (H, 2N+1) block-diagonal
    b2 = b2_ref[...]                     # (1, 2N+1)

    # loop-invariant context contribution, computed once (hoisted out of the loop)
    ctx_h = jnp.dot(ctx_ref[...], w1c_ref[...],
                    preferred_element_type=jnp.float32) + b1   # (B, H)

    sqrt_dt = float(dt) ** 0.5
    pad = jnp.zeros((B, P - (3 * N + 3)), jnp.float32)         # hoisted broadcast

    for i in range(length):              # static trip count -> fully unrolled
        tn = (t - mean_T) / std_T
        h = jnp.tanh(jnp.dot(x, w1x, preferred_element_type=jnp.float32)
                     + tn * w1t + ctx_h)                       # (B, H)
        out2 = jnp.dot(h, w2, preferred_element_type=jnp.float32) + b2   # (B, 2N+1)

        drift = out2[:, :N] + jnp.dot(x, wmat, preferred_element_type=jnp.float32)
        sigma = jax.nn.softplus(out2[:, N:2 * N])
        loggam = out2[:, 2 * N:2 * N + 1]

        # single lane-dense store per step: [t | x | s | logGamma | sigma | drift | 0pad]
        pack_ref[i] = jnp.concatenate([t, x, s, loggam, sigma, drift, pad], axis=-1)

        noise = noise_ref[i]                                   # (B, N)
        x = x + drift * dt + sigma * sqrt_dt * noise
        s = s * jnp.exp(-jnp.exp(loggam) * dt)
        t = t + dt


def sde_solve(params, x0, t0, context, noise, *, length, dt, mean_T, std_T):
    B, N = x0.shape
    f_nn = params['f_w2'].shape[0]
    gsz = params['g_w2'].shape[0]
    Htot = 2 * f_nn + gsz

    # Pre-split / fuse first-layer weights in the wrapper (rows: [x | t | context])
    w1x = jnp.concatenate([params['f_w1'][:N], params['s_w1'][:N],
                           params['g_w1'][:N]], axis=1)                       # (N, H)
    w1t = jnp.concatenate([params['f_w1'][N:N + 1], params['s_w1'][N:N + 1],
                           params['g_w1'][N:N + 1]], axis=1)                  # (1, H)
    w1c = jnp.concatenate([params['f_w1'][N + 1:], params['s_w1'][N + 1:],
                           params['g_w1'][N + 1:]], axis=1)                   # (C, H)
    b1 = jnp.concatenate([params['f_b1'], params['s_b1'], params['g_b1']], axis=1)

    # Block-diagonal fused second layer: [drift | sigma | logGamma]
    w2 = jnp.zeros((Htot, 2 * N + 1), jnp.float32)
    w2 = w2.at[:f_nn, :N].set(params['f_w2'])
    w2 = w2.at[f_nn:2 * f_nn, N:2 * N].set(params['s_w2'])
    w2 = w2.at[2 * f_nn:, 2 * N:].set(params['g_w2'])
    b2 = jnp.concatenate([params['f_b2'], params['s_b2'], params['g_b2']], axis=1)

    # packed per-step row width, padded to a multiple of 128 lanes (unmasked stores)
    P = max(128, ((3 * N + 3 + 127) // 128) * 128)

    # TODO(synk): at realistic batch sizes, add a batch grid axis with
    # dimension_semantics=("parallel",) and stream noise over time (v7x: 2 TCs, 64MiB VMEM).
    packed = pl.pallas_call(
        functools.partial(_sde_kernel, length=length, dt=dt,
                          mean_T=mean_T, std_T=std_T, N=N, P=P),
        out_shape=jax.ShapeDtypeStruct((length, B, P), jnp.float32),
        in_specs=[_VMEM] * 11,
        out_specs=_VMEM,
    )(x0, t0[:, None], context, params['mean'].T, noise,
      w1x, w1t, w1c, b1, w2, b2)

    # split + transpose back to PyTorch (batch, length, ...) convention
    t = jnp.transpose(packed[:, :, 0], (1, 0))
    pred_X = jnp.transpose(packed[:, :, 1:1 + N], (1, 0, 2))
    pred_S = jnp.transpose(packed[:, :, 1 + N], (1, 0))
    pred_logGamma = jnp.transpose(packed[:, :, 2 + N], (1, 0))
    pred_sigma_X = jnp.transpose(packed[:, :, 3 + N:3 + 2 * N], (1, 0, 2))
    drifts = jnp.transpose(packed[:, :, 3 + 2 * N:3 + 3 * N], (1, 0, 2))
    return t, pred_X, pred_S, pred_logGamma, pred_sigma_X, drifts


# ----------------------------------------------------------------------------
# Parameter init (deterministic, shapes implied by Model.__init__)
# ----------------------------------------------------------------------------
def init_params(key, N, gamma_size, z_size, decoder_size, Nflows, flow_hidden,
                f_nn_size, env_size, med_size):
    keys = jax.random.split(key, 16)

    def w(k, shape, scale=0.1):
        return scale * jax.random.normal(k, shape, dtype=jnp.float32)

    enc_in = 1 + 2 * N + env_size + med_size
    dec_in = z_size + 1 + env_size + med_size
    dyn_in = N + 1 + env_size + med_size
    return dict(
        mean=0.03 * jax.random.normal(keys[0], (N, N), dtype=jnp.float32),
        logscale=jnp.log(0.03 * jnp.ones((N, N), jnp.float32)),
        logalpha=jnp.log(10.0 * jnp.ones((N,), jnp.float32)),
        logbeta=jnp.log(100.0 * jnp.ones((N,), jnp.float32)),
        enc_w1=w(keys[1], (enc_in, decoder_size)), enc_b1=jnp.zeros((1, decoder_size), jnp.float32),
        enc_wmu=w(keys[2], (decoder_size, z_size)), enc_bmu=jnp.zeros((1, z_size), jnp.float32),
        enc_wlv=w(keys[3], (decoder_size, z_size)), enc_blv=jnp.zeros((1, z_size), jnp.float32),
        flow_u=w(keys[4], (Nflows, z_size)),
        flow_w=w(keys[5], (Nflows, z_size)),
        flow_b=jnp.zeros((Nflows,), jnp.float32),
        dec_w1=w(keys[6], (dec_in, decoder_size)), dec_b1=jnp.zeros((1, decoder_size), jnp.float32),
        dec_w2=w(keys[7], (decoder_size, N)), dec_b2=jnp.zeros((1, N), jnp.float32),
        f_w1=w(keys[8], (dyn_in, f_nn_size)), f_b1=jnp.zeros((1, f_nn_size), jnp.float32),
        f_w2=w(keys[9], (f_nn_size, N)), f_b2=jnp.zeros((1, N), jnp.float32),
        s_w1=w(keys[10], (dyn_in, f_nn_size)), s_b1=jnp.zeros((1, f_nn_size), jnp.float32),
        s_w2=w(keys[11], (f_nn_size, N)), s_b2=jnp.zeros((1, N), jnp.float32),
        g_w1=w(keys[12], (dyn_in, gamma_size)), g_b1=jnp.zeros((1, gamma_size), jnp.float32),
        g_w2=w(keys[13], (gamma_size, 1)), g_b2=jnp.zeros((1, 1), jnp.float32),
    )


# ----------------------------------------------------------------------------
# Model.forward equivalent
# ----------------------------------------------------------------------------
def model_forward(params, data, key, sigma_y=None, test=False, *,
                  mean_T, std_T, dt, length, Nflows, z_size):
    y = data['Y']; times = data['times']; mask = data['mask']; mask0 = data['mask0']
    survival_mask = data['survival_mask']; dead_mask = data['dead_mask']
    after_dead_mask = data['after_dead_mask']; censored = data['censored']
    env = data['env']; med = data['med']; sample_weights = data['weights']
    predict_missing = data['missing']; pop_std = data['pop std']

    B, _, N = y.shape
    y0_ = y[:, 0, :]
    t0 = times[:, 0]
    med0 = med[:, 0, :]
    trans_t0 = (t0[:, None] - mean_T) / std_T

    k1, k2, k3 = jax.random.split(key, 3)
    noise_y0 = jax.random.normal(k1, y0_.shape, dtype=jnp.float32)
    m = mask[:, 0, :] if test else mask0
    y0 = m * y0_ + (1.0 - m) * (predict_missing + pop_std * noise_y0)

    eps_z = jax.random.normal(k2, (B, z_size), dtype=jnp.float32)
    sample0, z_sample, mu0, logvar0, prior_entropy, log_det = vae_impute(
        params, trans_t0, y0, m, env, med0, eps_z, Nflows)

    # TODO(synk): recon_mean_x0 reuses the in-kernel decoder output (same post-flow z
    # and identical conditioning as sample0), removing the duplicate decoder pass.
    recon_mean_x0 = sample0
    x0 = mask[:, 0, :] * y0_ + (1.0 - mask[:, 0, :]) * recon_mean_x0
    context = jnp.concatenate([env, med0], axis=-1)

    sde_noise = jax.random.normal(k3, (length, B, N), dtype=jnp.float32)
    t, pred_X, pred_S, pred_logGamma, pred_sigma_X, drifts = sde_solve(
        params, x0, t0, context, sde_noise,
        length=length, dt=dt, mean_T=mean_T, std_T=std_T)

    return (pred_X, t, pred_S, pred_logGamma, pred_sigma_X, context, y, times,
            mask, survival_mask, dead_mask, after_dead_mask, censored,
            sample_weights, med, env, z_sample, prior_entropy, log_det,
            recon_mean_x0, drifts, mask0, params['mean'])


# ----------------------------------------------------------------------------
if __name__ == "__main__":
    # Small, self-consistent shapes
    B, N, T = 8, 8, 5
    env_size, med_size = 10, 26          # context size = 36 (matches 10 + 26)
    gamma_size, z_size = 8, 16
    decoder_size, Nflows, flow_hidden, f_nn_size = 32, 2, 16, 16
    mean_T, std_T = 40.0, 10.0
    dt, length = 0.5, 25

    root = jax.random.PRNGKey(0)
    kp, kd, kf = jax.random.split(root, 3)
    params = init_params(kp, N, gamma_size, z_size, decoder_size, Nflows,
                         flow_hidden, f_nn_size, env_size, med_size)

    dk = jax.random.split(kd, 10)
    data = {
        'Y': jax.random.normal(dk[0], (B, T, N), dtype=jnp.float32),
        'times': 40.0 + 2.0 * jnp.arange(T, dtype=jnp.float32)[None, :]
                 + jax.random.uniform(dk[1], (B, 1), dtype=jnp.float32),
        'mask': (jax.random.uniform(dk[2], (B, T, N)) > 0.3).astype(jnp.float32),
        'mask0': (jax.random.uniform(dk[3], (B, N)) > 0.3).astype(jnp.float32),
        'survival_mask': jnp.ones((B, T), jnp.float32),
        'dead_mask': jnp.zeros((B, T), jnp.float32),
        'after_dead_mask': jnp.zeros((B, T), jnp.float32),
        'censored': jnp.zeros((B,), jnp.float32),
        'env': jax.random.normal(dk[4], (B, env_size), dtype=jnp.float32),
        'med': (jax.random.uniform(dk[5], (B, T, med_size)) > 0.5).astype(jnp.float32),
        'weights': jnp.ones((B,), jnp.float32),
        'missing': jax.random.normal(dk[6], (N,), dtype=jnp.float32),
        'pop std': jnp.abs(jax.random.normal(dk[7], (N,), dtype=jnp.float32)),
    }
    sigma_y = 0.1 * jnp.ones((N,), jnp.float32)

    outs = model_forward(params, data, kf, sigma_y, test=False,
                         mean_T=mean_T, std_T=std_T, dt=dt, length=length,
                         Nflows=Nflows, z_size=z_size)
    jax.block_until_ready(outs)

    pred_X, t, pred_S = outs[0], outs[1], outs[2]
    assert pred_X.shape == (B, length, N)
    assert t.shape == (B, length)
    assert pred_S.shape == (B, length)
    assert bool(jnp.all(jnp.isfinite(pred_X)))
    assert bool(jnp.all(jnp.isfinite(outs[3])))   # pred_logGamma
    assert bool(jnp.all(jnp.isfinite(outs[18])))  # log_det
    print("KERNEL_OK")
</pallas_src>

<mosaic_0001>
module attributes {stable_mosaic.version = 11 : i64} {
  func.func @_vae_kernel(%arg0: memref<8x53xf32, #tpu.memory_space<vmem>>, %arg1: memref<8x37xf32, #tpu.memory_space<vmem>>, %arg2: memref<8x16xf32, #tpu.memory_space<vmem>>, %arg3: memref<53x32xf32, #tpu.memory_space<vmem>>, %arg4: memref<1x32xf32, #tpu.memory_space<vmem>>, %arg5: memref<32x16xf32, #tpu.memory_space<vmem>>, %arg6: memref<1x16xf32, #tpu.memory_space<vmem>>, %arg7: memref<32x16xf32, #tpu.memory_space<vmem>>, %arg8: memref<1x16xf32, #tpu.memory_space<vmem>>, %arg9: memref<2x16xf32, #tpu.memory_space<vmem>>, %arg10: memref<2x16xf32, #tpu.memory_space<vmem>>, %arg11: memref<2x1xf32, #tpu.memory_space<vmem>>, %arg12: memref<16x32xf32, #tpu.memory_space<vmem>>, %arg13: memref<37x32xf32, #tpu.memory_space<vmem>>, %arg14: memref<1x32xf32, #tpu.memory_space<vmem>>, %arg15: memref<32x8xf32, #tpu.memory_space<vmem>>, %arg16: memref<1x8xf32, #tpu.memory_space<vmem>>, %arg17: memref<8x8xf32, #tpu.memory_space<vmem>>, %arg18: memref<8x16xf32, #tpu.memory_space<vmem>>, %arg19: memref<8x16xf32, #tpu.memory_space<vmem>>, %arg20: memref<8x16xf32, #tpu.memory_space<vmem>>, %arg21: memref<8x1xf32, #tpu.memory_space<vmem>>, %arg22: memref<8x1xf32, #tpu.memory_space<vmem>>) attributes {dimension_semantics = [], scalar_prefetch = 0 : i64, scratch_operands = 0 : i64, tpu.core_type = #tpu.core_type<tc>} {
    %c0 = arith.constant 0 : index
    %c0_0 = arith.constant 0 : index
    %0 = vector.load %arg0[%c0, %c0_0] : memref<8x53xf32, #tpu.memory_space<vmem>>, vector<8x53xf32>
    %c0_1 = arith.constant 0 : index
    %c0_2 = arith.constant 0 : index
    %1 = vector.load %arg3[%c0_1, %c0_2] : memref<53x32xf32, #tpu.memory_space<vmem>>, vector<53x32xf32>
    %cst = arith.constant dense<0.000000e+00> : vector<8x32xf32>
    %2 = tpu.matmul %0, %1, %cst {dimension_numbers = #tpu.dot_dimension_numbers<[1], [0], [0], [1], [0, 0, 1, 1], [], []>} : vector<8x53xf32>, vector<53x32xf32>, vector<8x32xf32> -> vector<8x32xf32>
    %c0_3 = arith.constant 0 : index
    %c0_4 = arith.constant 0 : index
    %3 = vector.load %arg4[%c0_3, %c0_4] : memref<1x32xf32, #tpu.memory_space<vmem>>, vector<1x32xf32>
    %4 = vector.broadcast %3 : vector<1x32xf32> to vector<8x32xf32>
    %5 = arith.addf %2, %4 : vector<8x32xf32>
    %6 = math.tanh %5 : vector<8x32xf32>
    %c0_5 = arith.constant 0 : index
    %c0_6 = arith.constant 0 : index
    %7 = vector.load %arg5[%c0_5, %c0_6] : memref<32x16xf32, #tpu.memory_space<vmem>>, vector<32x16xf32>
    %cst_7 = arith.constant dense<0.000000e+00> : vector<8x16xf32>
    %8 = tpu.matmul %6, %7, %cst_7 {dimension_numbers = #tpu.dot_dimension_numbers<[1], [0], [0], [1], [0, 0, 1, 1], [], []>} : vector<8x32xf32>, vector<32x16xf32>, vector<8x16xf32> -> vector<8x16xf32>
    %c0_8 = arith.constant 0 : index
    %c0_9 = arith.constant 0 : index
    %9 = vector.load %arg6[%c0_8, %c0_9] : memref<1x16xf32, #tpu.memory_space<vmem>>, vector<1x16xf32>
    %10 = vector.broadcast %9 : vector<1x16xf32> to vector<8x16xf32>
    %11 = arith.addf %8, %10 : vector<8x16xf32>
    %c0_10 = arith.constant 0 : index
    %c0_11 = arith.constant 0 : index
    %12 = vector.load %arg7[%c0_10, %c0_11] : memref<32x16xf32, #tpu.memory_space<vmem>>, vector<32x16xf32>
    %cst_12 = arith.constant dense<0.000000e+00> : vector<8x16xf32>
    %13 = tpu.matmul %6, %12, %cst_12 {dimension_numbers = #tpu.dot_dimension_numbers<[1], [0], [0], [1], [0, 0, 1, 1], [], []>} : vector<8x32xf32>, vector<32x16xf32>, vector<8x16xf32> -> vector<8x16xf32>
    %c0_13 = arith.constant 0 : index
    %c0_14 = arith.constant 0 : index
    %14 = vector.load %arg8[%c0_13, %c0_14] : memref<1x16xf32, #tpu.memory_space<vmem>>, vector<1x16xf32>
    %15 = vector.broadcast %14 : vector<1x16xf32> to vector<8x16xf32>
    %16 = arith.addf %13, %15 : vector<8x16xf32>
    %cst_15 = arith.constant 5.000000e-01 : f32
    %17 = vector.broadcast %cst_15 : f32 to vector<8x16xf32>
    %18 = arith.mulf %17, %16 : vector<8x16xf32>
    %19 = math.exp %18 : vector<8x16xf32>
    %c0_16 = arith.constant 0 : index
    %c0_17 = arith.constant 0 : index
    %20 = vector.load %arg2[%c0_16, %c0_17] : memref<8x16xf32, #tpu.memory_space<vmem>>, vector<8x16xf32>
    %21 = arith.mulf %19, %20 : vector<8x16xf32>
    %22 = arith.addf %11, %21 : vector<8x16xf32>
    %cst_18 = arith.constant 0.000000e+00 : f32
    %23 = vector.broadcast %cst_18 : f32 to vector<8x1xf32>
    %c0_19 = arith.constant 0 : index
    %c0_20 = arith.constant 0 : index
    %24 = vector.load %arg9[%c0_19, %c0_20] : memref<2x16xf32, #tpu.memory_space<vmem>>, vector<1x16xf32>
    %c0_21 = arith.constant 0 : index
    %c0_22 = arith.constant 0 : index
    %25 = vector.load %arg10[%c0_21, %c0_22] : memref<2x16xf32, #tpu.memory_space<vmem>>, vector<1x16xf32>
    %c0_23 = arith.constant 0 : index
    %c0_24 = arith.constant 0 : index
    %26 = vector.load %arg11[%c0_23, %c0_24] : memref<2x1xf32, #tpu.memory_space<vmem>>, vector<1x1xf32>
    %27 = vector.broadcast %25 : vector<1x16xf32> to vector<8x16xf32>
    %28 = arith.mulf %22, %27 : vector<8x16xf32>
    %cst_25 = arith.constant dense<0.000000e+00> : vector<8xf32>
    %29 = vector.multi_reduction <add>, %28, %cst_25 [1] : vector<8x16xf32> to vector<8xf32>
    %30 = vector.shape_cast %29 : vector<8xf32> to vector<8x1xf32>
    %31 = vector.broadcast %26 : vector<1x1xf32> to vector<8x1xf32>
    %32 = arith.addf %30, %31 : vector<8x1xf32>
    %33 = math.tanh %32 : vector<8x1xf32>
    %34 = vector.broadcast %24 : vector<1x16xf32> to vector<8x16xf32>
    %35 = vector.broadcast %33 : vector<8x1xf32> to vector<8x16xf32>
    %36 = arith.mulf %34, %35 : vector<8x16xf32>
    %37 = arith.addf %22, %36 : vector<8x16xf32>
    %38 = arith.mulf %25, %24 : vector<1x16xf32>
    %cst_26 = arith.constant dense<0.000000e+00> : vector<1xf32>
    %39 = vector.multi_reduction <add>, %38, %cst_26 [1] : vector<1x16xf32> to vector<1xf32>
    %40 = vector.shape_cast %39 : vector<1xf32> to vector<1x1xf32>
    %41 = arith.mulf %33, %33 : vector<8x1xf32>
    %cst_27 = arith.constant 1.000000e+00 : f32
    %42 = vector.broadcast %cst_27 : f32 to vector<8x1xf32>
    %43 = arith.subf %42, %41 : vector<8x1xf32>
    %44 = vector.broadcast %40 : vector<1x1xf32> to vector<8x1xf32>
    %45 = arith.mulf %43, %44 : vector<8x1xf32>
    %cst_28 = arith.constant 1.000000e+00 : f32
    %46 = vector.broadcast %cst_28 : f32 to vector<8x1xf32>
    %47 = arith.addf %46, %45 : vector<8x1xf32>
    %48 = math.absf %47 : vector<8x1xf32>
    %cst_29 = arith.constant 9.99999993E-9 : f32
    %49 = vector.broadcast %cst_29 : f32 to vector<8x1xf32>
    %50 = arith.addf %48, %49 : vector<8x1xf32>
    %51 = math.log %50 : vector<8x1xf32>
    %52 = arith.addf %23, %51 : vector<8x1xf32>
    %c1 = arith.constant 1 : index
    %c0_30 = arith.constant 0 : index
    %53 = vector.load %arg9[%c1, %c0_30] : memref<2x16xf32, #tpu.memory_space<vmem>>, vector<1x16xf32>
    %c1_31 = arith.constant 1 : index
    %c0_32 = arith.constant 0 : index
    %54 = vector.load %arg10[%c1_31, %c0_32] : memref<2x16xf32, #tpu.memory_space<vmem>>, vector<1x16xf32>
    %c1_33 = arith.constant 1 : index
    %c0_34 = arith.constant 0 : index
    %55 = vector.load %arg11[%c1_33, %c0_34] : memref<2x1xf32, #tpu.memory_space<vmem>>, vector<1x1xf32>
    %56 = vector.broadcast %54 : vector<1x16xf32> to vector<8x16xf32>
    %57 = arith.mulf %37, %56 : vector<8x16xf32>
    %cst_35 = arith.constant dense<0.000000e+00> : vector<8xf32>
    %58 = vector.multi_reduction <add>, %57, %cst_35 [1] : vector<8x16xf32> to vector<8xf32>
    %59 = vector.shape_cast %58 : vector<8xf32> to vector<8x1xf32>
    %60 = vector.broadcast %55 : vector<1x1xf32> to vector<8x1xf32>
    %61 = arith.addf %59, %60 : vector<8x1xf32>
    %62 = math.tanh %61 : vector<8x1xf32>
    %63 = vector.broadcast %53 : vector<1x16xf32> to vector<8x16xf32>
    %64 = vector.broadcast %62 : vector<8x1xf32> to vector<8x16xf32>
    %65 = arith.mulf %63, %64 : vector<8x16xf32>
    %66 = arith.addf %37, %65 : vector<8x16xf32>
    %67 = arith.mulf %54, %53 : vector<1x16xf32>
    %cst_36 = arith.constant dense<0.000000e+00> : vector<1xf32>
    %68 = vector.multi_reduction <add>, %67, %cst_36 [1] : vector<1x16xf32> to vector<1xf32>
    %69 = vector.shape_cast %68 : vector<1xf32> to vector<1x1xf32>
    %70 = arith.mulf %62, %62 : vector<8x1xf32>
    %cst_37 = arith.constant 1.000000e+00 : f32
    %71 = vector.broadcast %cst_37 : f32 to vector<8x1xf32>
    %72 = arith.subf %71, %70 : vector<8x1xf32>
    %73 = vector.broadcast %69 : vector<1x1xf32> to vector<8x1xf32>
    %74 = arith.mulf %72, %73 : vector<8x1xf32>
    %cst_38 = arith.constant 1.000000e+00 : f32
    %75 = vector.broadcast %cst_38 : f32 to vector<8x1xf32>
    %76 = arith.addf %75, %74 : vector<8x1xf32>
    %77 = math.absf %76 : vector<8x1xf32>
    %cst_39 = arith.constant 9.99999993E-9 : f32
    %78 = vector.broadcast %cst_39 : f32 to vector<8x1xf32>
    %79 = arith.addf %77, %78 : vector<8x1xf32>
    %80 = math.log %79 : vector<8x1xf32>
    %81 = arith.addf %52, %80 : vector<8x1xf32>
    %cst_40 = arith.constant 1.83787704 : f32
    %82 = vector.broadcast %cst_40 : f32 to vector<8x16xf32>
    %83 = arith.addf %16, %82 : vector<8x16xf32>
    %cst_41 = arith.constant 1.000000e+00 : f32
    %84 = vector.broadcast %cst_41 : f32 to vector<8x16xf32>
    %85 = arith.addf %83, %84 : vector<8x16xf32>
    %cst_42 = arith.constant dense<0.000000e+00> : vector<8xf32>
    %86 = vector.multi_reduction <add>, %85, %cst_42 [1] : vector<8x16xf32> to vector<8xf32>
    %87 = vector.shape_cast %86 : vector<8xf32> to vector<8x1xf32>
    %cst_43 = arith.constant 5.000000e-01 : f32
    %88 = vector.broadcast %cst_43 : f32 to vector<8x1xf32>
    %89 = arith.mulf %88, %87 : vector<8x1xf32>
    %c0_44 = arith.constant 0 : index
    %c0_45 = arith.constant 0 : index
    %90 = vector.load %arg12[%c0_44, %c0_45] : memref<16x32xf32, #tpu.memory_space<vmem>>, vector<16x32xf32>
    %cst_46 = arith.constant dense<0.000000e+00> : vector<8x32xf32>
    %91 = tpu.matmul %66, %90, %cst_46 {dimension_numbers = #tpu.dot_dimension_numbers<[1], [0], [0], [1], [0, 0, 1, 1], [], []>} : vector<8x16xf32>, vector<16x32xf32>, vector<8x32xf32> -> vector<8x32xf32>
    %c0_47 = arith.constant 0 : index
    %c0_48 = arith.constant 0 : index
    %92 = vector.load %arg1[%c0_47, %c0_48] : memref<8x37xf32, #tpu.memory_space<vmem>>, vector<8x37xf32>
    %c0_49 = arith.constant 0 : index
    %c0_50 = arith.constant 0 : index
    %93 = vector.load %arg13[%c0_49, %c0_50] : memref<37x32xf32, #tpu.memory_space<vmem>>, vector<37x32xf32>
    %cst_51 = arith.constant dense<0.000000e+00> : vector<8x32xf32>
    %94 = tpu.matmul %92, %93, %cst_51 {dimension_numbers = #tpu.dot_dimension_numbers<[1], [0], [0], [1], [0, 0, 1, 1], [], []>} : vector<8x37xf32>, vector<37x32xf32>, vector<8x32xf32> -> vector<8x32xf32>
    %95 = arith.addf %91, %94 : vector<8x32xf32>
    %c0_52 = arith.constant 0 : index
    %c0_53 = arith.constant 0 : index
    %96 = vector.load %arg14[%c0_52, %c0_53] : memref<1x32xf32, #tpu.memory_space<vmem>>, vector<1x32xf32>
    %97 = vector.broadcast %96 : vector<1x32xf32> to vector<8x32xf32>
    %98 = arith.addf %95, %97 : vector<8x32xf32>
    %99 = math.tanh %98 : vector<8x32xf32>
    %c0_54 = arith.constant 0 : index
    %c0_55 = arith.constant 0 : index
    %100 = vector.load %arg15[%c0_54, %c0_55] : memref<32x8xf32, #tpu.memory_space<vmem>>, vector<32x8xf32>
    %cst_56 = arith.constant dense<0.000000e+00> : vector<8x8xf32>
    %101 = tpu.matmul %99, %100, %cst_56 {dimension_numbers = #tpu.dot_dimension_numbers<[1], [0], [0], [1], [0, 0, 1, 1], [], []>} : vector<8x32xf32>, vector<32x8xf32>, vector<8x8xf32> -> vector<8x8xf32>
    %c0_57 = arith.constant 0 : index
    %c0_58 = arith.constant 0 : index
    %102 = vector.load %arg16[%c0_57, %c0_58] : memref<1x8xf32, #tpu.memory_space<vmem>>, vector<1x8xf32>
    %103 = vector.broadcast %102 : vector<1x8xf32> to vector<8x8xf32>
    %104 = arith.addf %101, %103 : vector<8x8xf32>
    %c0_59 = arith.constant 0 : index
    %c0_60 = arith.constant 0 : index
    %105 = vector.load %arg17[%c0_59, %c0_60] : memref<8x8xf32, #tpu.memory_space<vmem>>, vector<8x8xf32>
    tpu.vector_store %arg17[%c0_59, %c0_60], %104 {strides = array<i32>} : memref<8x8xf32, #tpu.memory_space<vmem>>, vector<8x8xf32>,
    %c0_61 = arith.constant 0 : index
    %c0_62 = arith.constant 0 : index
    %106 = vector.load %arg18[%c0_61, %c0_62] : memref<8x16xf32, #tpu.memory_space<vmem>>, vector<8x16xf32>
    tpu.vector_store %arg18[%c0_61, %c0_62], %66 {strides = array<i32>} : memref<8x16xf32, #tpu.memory_space<vmem>>, vector<8x16xf32>,
    %c0_63 = arith.constant 0 : index
    %c0_64 = arith.constant 0 : index
    %107 = vector.load %arg19[%c0_63, %c0_64] : memref<8x16xf32, #tpu.memory_space<vmem>>, vector<8x16xf32>
    tpu.vector_store %arg19[%c0_63, %c0_64], %11 {strides = array<i32>} : memref<8x16xf32, #tpu.memory_space<vmem>>, vector<8x16xf32>,
    %c0_65 = arith.constant 0 : index
    %c0_66 = arith.constant 0 : index
    %108 = vector.load %arg20[%c0_65, %c0_66] : memref<8x16xf32, #tpu.memory_space<vmem>>, vector<8x16xf32>
    tpu.vector_store %arg20[%c0_65, %c0_66], %16 {strides = array<i32>} : memref<8x16xf32, #tpu.memory_space<vmem>>, vector<8x16xf32>,
    %c0_67 = arith.constant 0 : index
    %c0_68 = arith.constant 0 : index
    %109 = vector.load %arg21[%c0_67, %c0_68] : memref<8x1xf32, #tpu.memory_space<vmem>>, vector<8x1xf32>
    tpu.vector_store %arg21[%c0_67, %c0_68], %89 {strides = array<i32>} : memref<8x1xf32, #tpu.memory_space<vmem>>, vector<8x1xf32>,
    %c0_69 = arith.constant 0 : index
    %c0_70 = arith.constant 0 : index
    %110 = vector.load %arg22[%c0_69, %c0_70] : memref<8x1xf32, #tpu.memory_space<vmem>>, vector<8x1xf32>
    tpu.vector_store %arg22[%c0_69, %c0_70], %81 {strides = array<i32>} : memref<8x1xf32, #tpu.memory_space<vmem>>, vector<8x1xf32>,
    return
  }
}

</mosaic_0001>

<bundles_post_ra>
// kernel: tpu_custom_call.1
= control target key start
LH: loop header
LB: loop body
LE: loop exit
PB: predicated region body
PF: predicated region fallthrough
CT: control target
= control target key end

     0   :  { %s1309_s0 = inlined_call_operand.vmem [shape: f32[8,53], index: 0, kind: input, shape index: {}]   ;;  %s1310_s1 = inlined_call_operand.vmem [shape: f32[8,37], index: 1, kind: input, shape index: {}]   ;;  %s1311_s2 = inlined_call_operand.vmem [shape: f32[8,16], index: 2, kind: input, shape index: {}]   ;;  %s1312_s3 = inlined_call_operand.vmem [shape: f32[53,32], index: 3, kind: input, shape index: {}]   ;;  %s1313_s4 = inlined_call_operand.vmem [shape: f32[1,32], index: 4, kind: input, shape index: {}]   ;;  %s1314_s5 = inlined_call_operand.vmem [shape: f32[32,16], index: 5, kind: input, shape index: {}]   ;;  %s1315_s6 = inlined_call_operand.vmem [shape: f32[1,16], index: 6, kind: input, shape index: {}]   ;;  %s1316_s7 = inlined_call_operand.vmem [shape: f32[32,16], index: 7, kind: input, shape index: {}]   ;;  %s1317_s8 = inlined_call_operand.vmem [shape: f32[1,16], index: 8, kind: input, shape index: {}]   ;;  %s1318_s9 = inlined_call_operand.vmem [shape: f32[2,16], index: 9, kind: input, shape index: {}]   ;;  %s1319_s10 = inlined_call_operand.vmem [shape: f32[2,16], index: 10, kind: input, shape index: {}]   ;;  %s1320_s11 = inlined_call_operand.vmem [shape: f32[2,1], index: 11, kind: input, shape index: {}]   ;;  %s1321_s12 = inlined_call_operand.vmem [shape: f32[16,32], index: 12, kind: input, shape index: {}]   ;;  %s1322_s13 = inlined_call_operand.vmem [shape: f32[37,32], index: 13, kind: input, shape index: {}]   ;;  %s1323_s14 = inlined_call_operand.vmem [shape: f32[1,32], index: 14, kind: input, shape index: {}]   ;;  %s1324_s15 = inlined_call_operand.vmem [shape: f32[32,8], index: 15, kind: input, shape index: {}]   ;;  %s1325_s16 = inlined_call_operand.vmem [shape: f32[1,8], index: 16, kind: input, shape index: {}]   ;;  %s1326_s17 = inlined_call_operand.hbm [shape: f32[8,8], index: 17, kind: output, shape index: {0}]   ;;  %s1327_s18 = inlined_call_operand.hbm [shape: f32[8,16], index: 18, kind: output, shape index: {1}]   ;;  %s1328_s19 = inlined_call_operand.hbm [shape: f32[8,16], index: 19, kind: output, shape index: {2}]   ;;  %s1329_s20 = inlined_call_operand.hbm [shape: f32[8,16], index: 20, kind: output, shape index: {3}]   ;;  %s1330_s21 = inlined_call_operand.vmem [shape: f32[8,1], index: 21, kind: output, shape index: {4}]   ;;  %s1331_s22 = inlined_call_operand.vmem [shape: f32[8,1], index: 22, kind: output, shape index: {5}]  }
   0x1   :  { %1334 = sst [smem:[#allocation12_spill]] %s1309_s0 }
   0x2   :  { %1335 = sst [smem:[#allocation13_spill]] %s1310_s1 }
   0x3   :  { %1336 = sst [smem:[#allocation14_spill]] %s1311_s2 }
   0x4   :  { %1337 = sst [smem:[#allocation15_spill]] %s1312_s3 }
   0x5   :  { %1338 = sst [smem:[#allocation16_spill]] %s1313_s4 }
   0x6   :  { %1339 = sst [smem:[#allocation17_spill]] %s1314_s5 }
   0x7   :  { %1340 = sst [smem:[#allocation18_spill]] %s1315_s6 }
   0x8   :  { %28 = vsyncpa [#allocation3], 0 }
   0x9   :  { %29 = vsyncpa [#allocation5], 0  ;;  %s1341_s29 = sld [smem:[#allocation15_spill]]  ;;  %vm84_vm0 = vcmask 1044480   ;;  %v977_v1 = vmov 0.0   ;;  %vm978_vm1 = vmmov 0  }
   0xa   :  { %798 = vmatprep.subr.mxu0 %v977_v1  ;;  %815 = vmatprep.subr.mxu1 %v977_v1 }
   0xb   :  { %812 = vmatprep.mubr.msk.f32.mxu0 %vm978_vm1, %v977_v1  ;;  %823 = vmatprep.mubr.msk.f32.mxu1 %vm978_vm1, %v977_v1 }
   0xf   :  { %v72_v0 = vld [vmem:[%s1341_s29 + $0x30] sm:$0x1f]  ;;  %v71_v2 = vld [vmem:[%s1341_s29 + $0x28] sm:$0xff]  ;;  %v70_v3 = vld [vmem:[%s1341_s29 + $0x20] sm:$0xff] }
  0x10   :  { %799 = vmatpush3.msk.msra.mxu0 %vm84_vm0, %v72_v0 }
  0x11   :  { %800 = vmatprep.subr.mxu0 %v977_v1 }
  0x12   :  { %30 = vsyncpa [#allocation8], 0  ;;  %801 = vmatpush3.msra.mxu0 %v71_v2  ;;  %v69_v4 = vld [vmem:[%s1341_s29 + $0x18] sm:$0xff]  ;;  %v68_v5 = vld [vmem:[%s1341_s29 + $0x10] sm:$0xff]  ;;  %s1342_s30 = sld [smem:[#allocation12_spill]]  ;;  %vm80_vm2 = vcmask 433152   ;;  %v334_v32 = vlaneseq }
  0x13   :  { %802 = vmatprep.subr.mxu0 %v977_v1  ;;  %v67_v6 = vld [vmem:[%s1341_s29 + $0x8] sm:$0xff]  ;;  %v66_v7 = vld [vmem:[%s1341_s29] sm:$0xff]  ;;  %s1343_s23 = sld [smem:[#allocation17_spill]]  ;;  %vm170_vm3 = vcmask 261120   ;;  %v247_v17 = vld [vmem:[%s1316_s7 + $0x18] sm:$0xff]  ;;  %vm339_vm4 = vcmask 130048  }
  0x14   :  { %803 = vmatpush3.msra.mxu0 %v70_v3  ;;  %s1344_s27 = sld [smem:[#allocation16_spill]]  ;;  %v246_v19 = vld [vmem:[%s1316_s7 + $0x10] sm:$0xff]  ;;  %v245_v20 = vld [vmem:[%s1316_s7 + $0x8] sm:$0xff]  ;;  %v244_v21 = vld [vmem:[%s1316_s7] sm:$0xff]  ;;  %v335_v33 = vshrl.u32 %v334_v32, 7  ;;  %v979_v43 = vmov 0  }
  0x15   :  { %804 = vmatprep.subr.mxu0 %v977_v1  ;;  %s1345_s6 = sld [smem:[#allocation18_spill]]  ;;  %v756_v26 = vld [vmem:[%s1317_s8] ss:$0 sm:$0xff]  ;;  %875 = vset.pattern.permute.xlu0 %v979_v43  ;;  %v378_v48 = vld [vmem:[%s1318_s9 + $0x1] sm:$0x1]  ;;  %vm361_vm5 = vcmask 122880  }
  0x16   :  { %805 = vmatpush3.msra.mxu0 %v69_v4  ;;  %v1192_v34 = vsub.s32 0, %v335_v33  ;;  %v332_v36 = vld [vmem:[%s1319_s10] sm:$0x1]  ;;  %876 = vset.pattern.permute.xlu1 %v979_v43  ;;  %v379_v49 = vld [vmem:[%s1319_s10 + $0x1] sm:$0x1]  ;;  %v435_v61 = vld [vmem:[%s1322_s13 + $0x18] sm:$0xff] }
  0x17   :  { %806 = vmatprep.subr.mxu0 %v977_v1  ;;  %v758_v44 = vld [vmem:[%s1320_s11] ss:$0 sm:$0xff]  ;;  %v406_v50 = vmul.f32 %v379_v49, %v378_v48  ;;  %v434_v62 = vld [vmem:[%s1322_s13 + $0x10] sm:$0xff]  ;;  %v433_v63 = vld [vmem:[%s1322_s13 + $0x8] sm:$0xff]  ;;  %s1347_s29 = sld [smem:[#allocation13_spill]]  ;;  %vm437_vm6 = vcmask 302080  }
  0x18   :  { %807 = vmatpush3.msra.mxu0 %v68_v5  ;;  %v65_v8 = vld [vmem:[%s1342_s30] sm:$0xff]  ;;  %v337_v39 = vrot.slane %v332_v36, %v1192_v34  ;;  %v384_v56 = vrot.slane %v379_v49, %v1192_v34  ;;  %v430_v4 = vld [vmem:[%s1321_s12 + $0x8] sm:$0xff]  ;;  %vm685_vm7 = vcmask 7168  }
  0x19   :  { %808 = vmatprep.subr.mxu0 %v977_v1  ;;  %v162_v9 = vld [vmem:[%s1343_s23 + $0x18] sm:$0xff]  ;;  %v161_v10 = vld [vmem:[%s1343_s23 + $0x10] sm:$0xff]  ;;  %v160_v11 = vld [vmem:[%s1343_s23 + $0x8] sm:$0xff]  ;;  %v407_v51 = vsel %vm361_vm5, %v406_v50, 0.0 }
  0x1a   :  { %809 = vmatpush3.msra.mxu0 %v67_v6  ;;  %816 = vmatpush3.msra.mxu1 %v162_v9  ;;  %v159_v12 = vld [vmem:[%s1343_s23] sm:$0xff] }
  0x1b   :  { %810 = vmatprep.subr.mxu0 %v977_v1  ;;  %817 = vmatprep.subr.mxu1 %v977_v1  ;;  %v751_v13 = vld [vmem:[%s1344_s27] ss:$0 sm:$0xff]  ;;  %s1346_s27 = sld [smem:[#allocation14_spill]]  ;;  %v759_v0 = vld [vmem:[%s1320_s11 + $0x1] ss:$0 sm:$0xff] }
  0x1c   :  { %811 = vmatpush3.msra.mxu0 %v66_v7  ;;  %818 = vmatpush3.msra.mxu1 %v161_v10  ;;  %v754_v22 = vld [vmem:[%s1345_s6] ss:$0 sm:$0xff] }
  0x1d   :  { %813 = vmatmul.mubr.msk.f32.vlgmr.msra.gmra.mxu0 %vm80_vm2, %v65_v8  ;;  %837 = vmatprep.subr.mxu0 %v977_v1  ;;  %v331_v52 = vld [vmem:[%s1318_s9] sm:$0x1] }
  0x1e   :  { %847 = vmatprep.mubr.msk.f32.mxu0 %vm978_vm1, %v977_v1  ;;  %819 = vmatprep.subr.mxu1 %v977_v1  ;;  %v352_v53 = vrot.slane %v331_v52, %v1192_v34  ;;  %v436_v60 = vld [vmem:[%s1322_s13 + $0x20] sm:$0x1f]  ;;  %v360_v9 = vmul.f32 %v332_v36, %v331_v52 }
  0x1f   :  { %820 = vmatpush3.msra.mxu1 %v160_v11  ;;  %838 = vmatpush3.msk.msra.mxu0 %vm84_vm0, %v436_v60  ;;  %v432_v5 = vld [vmem:[%s1322_s13] sm:$0xff] }
  0x20   :  { %821 = vmatprep.subr.mxu1 %v977_v1  ;;  %839 = vmatprep.subr.mxu0 %v977_v1  ;;  %v431_v6 = vld [vmem:[%s1347_s29] sm:$0xff]  ;;  %v362_v11 = vsel %vm361_vm5, %v360_v9, 0.0 }
  0x21   :  { %822 = vmatpush3.msra.mxu1 %v159_v12  ;;  %v328_v35 = vld [vmem:[%s1346_s27] sm:$0xff]  ;;  %840 = vmatpush3.msra.mxu0 %v435_v61 }
  0x22   :  { %826 = vmatprep.subr.mxu1 %v977_v1  ;;  %841 = vmatprep.subr.mxu0 %v977_v1  ;;  %v429_v7 = vld [vmem:[%s1321_s12] sm:$0xff] }
  0x23   :  { %842 = vmatpush3.msra.mxu0 %v434_v62 }
  0x24   :  { %843 = vmatprep.subr.mxu0 %v977_v1 }
  0x25   :  { %844 = vmatpush3.msra.mxu0 %v433_v63 }
  0x26   :  { %845 = vmatprep.subr.mxu0 %v977_v1 }
  0x27   :  { %846 = vmatpush3.msra.mxu0 %v432_v5 }
  0x28   :  { %848 = vmatmul.mubr.msk.f32.vlgmr.msra.gmra.mxu0 %vm437_vm6, %v431_v6 }
  0xdd   :  { %v154_v14 = vpop.f32.mrf.mxu0 }
  0xde   :  { %v155_v15 = vadd.f32 %v751_v13, %v154_v14  ;;  %v398_v14 = vrot.slane %v378_v48, %v1192_v34  ;;  %v763_v48 = vld [vmem:[%s1323_s14] ss:$0 sm:$0xff] }
  0xdf   :  { %v814_v16 = vpop.f32.mrf.mxu0 }
  0xe0   :  { %877 = vtanh.f32 %v155_v15 }
  0xed   :  { %v878_v18 = vpop.eup %877 }
  0xee   :  { %824 = vmatmul.mubr.msk.f32.vlgmr.msra.gmra.mxu1 %vm170_vm3, %v878_v18 }
  0xef   :  { %827 = vmatpush3.msra.mxu1 %v247_v17  ;;  %834 = vmatprep.mubr.msk.f32.mxu1 %vm978_vm1, %v977_v1 }
  0xf0   :  { %828 = vmatprep.subr.mxu1 %v977_v1 }
  0xf1   :  { %829 = vmatpush3.msra.mxu1 %v246_v19 }
  0xf2   :  { %830 = vmatprep.subr.mxu1 %v977_v1 }
  0xf3   :  { %831 = vmatpush3.msra.mxu1 %v245_v20 }
  0xf4   :  { %832 = vmatprep.subr.mxu1 %v977_v1 }
  0xf5   :  { %833 = vmatpush3.msra.mxu1 %v244_v21 }
  0xf6   :  { %835 = vmatmul.mubr.msk.f32.vlgmr.msra.gmra.mxu1 %vm170_vm3, %v878_v18  ;;  %850 = vmatprep.subr.mxu1 %v977_v1 }
  0xf7   :  { %854 = vmatprep.mubr.msk.f32.mxu1 %vm978_vm1, %v977_v1  ;;  %851 = vmatpush3.msra.mxu1 %v430_v4 }
  0xf8   :  { %852 = vmatprep.subr.mxu1 %v977_v1 }
  0xf9   :  { %853 = vmatpush3.msra.mxu1 %v429_v7 }
  0xfa   :  { %857 = vmatprep.subr.mxu1 %v977_v1 }
 0x1ae   :  { %v240_v23 = vpop.f32.mrf.mxu1 }
 0x1af   :  { %v241_v24 = vadd.f32 %v754_v22, %v240_v23 }
 0x1b0   :  { %v825_v25 = vpop.f32.mrf.mxu1 }
 0x1b1   :  { %683 = vst.msk [vmem:[#allocation6] sm:$0xff] %vm339_vm4, %v241_v24 }
 0x1b6   :  { %v321_v27 = vpop.f32.mrf.mxu1 }
 0x1b7   :  { %v1187_v28 = vadd.f32 %v756_v26, %v321_v27 }
 0x1b8   :  { %v836_v29 = vpop.f32.mrf.mxu1 }
 0x1b9   :  { %v325_v30 = vmul.f32 0.5, %v1187_v28  ;;  %684 = vst.msk [vmem:[#allocation7] sm:$0xff] %vm339_vm4, %v1187_v28  ;;  %v423_v10 = vadd.f32 1.837877, %v1187_v28 }
 0x1bb   :  { %v326_v31 = vmul.f32 1.442695, %v325_v30  ;;  %v424_v12 = vadd.f32 1.0, %v423_v10 }
 0x1bd   :  { %879 = vpow2.f32 %v326_v31  ;;  %v425_v13 = vsel %vm339_vm4, %v424_v12, 0.0 }
 0x1ca   :  { %v880_v37 = vpop.eup %879 }
 0x1cb   :  { %v329_v38 = vmul.f32 %v880_v37, %v328_v35  ;;  %v510_v37 = vpop.f32.mrf.mxu0 }
 0x1cd   :  { %v330_v40 = vadd.f32 %v329_v38, %v241_v24  ;;  %v849_v38 = vpop.f32.mrf.mxu0 }
 0x1cf   :  { %v338_v41 = vmul.f32 %v337_v39, %v330_v40 }
 0x1d1   :  { %v340_v42 = vsel %vm339_vm4, %v338_v41, 0.0  ;;  %v598_v41 = vld [vmem:[%s1324_s15 + $0x10] sm:$0xff] }
 0x1d2   :  { %341 = vadd.xlane.f32.xlu0 %v340_v42 }
 0x25b   :  { %v342_v45 = vpop.xlane.xlu0 %341 }
 0x25c   :  { %v347_v46 = vadd.f32 %v758_v44, %v342_v45  ;;  %v597_v44 = vld [vmem:[%s1324_s15 + $0x8] sm:$0xff] }
 0x25e   :  { %881 = vtanh.f32 %v347_v46  ;;  %v596_v46 = vld [vmem:[%s1324_s15] sm:$0xff] }
 0x26b   :  { %v1205_v47 = vpop.eup %881 }
 0x26c   :  { %355 = vperm.xlu0 %875, %v1205_v47   ;;  %v365_v24 = vmul.f32 %v1205_v47, %v1205_v47 }
 0x26e   :  { %v366_v27 = vsub.f32 1.0, %v365_v24 }
 0x28b   :  { %408 = vadd.xlane.f32.xlu0 %v407_v51 }
 0x2e7   :  { %v356_v54 = vpop.permute.xlu0 %355 }
 0x2e8   :  { %v358_v55 = vmul.f32 %v356_v54, %v352_v53 }
 0x2ea   :  { %v359_v57 = vadd.f32 %v358_v55, %v330_v40 }
 0x2ec   :  { %v385_v58 = vmul.f32 %v384_v56, %v359_v57 }
 0x2ee   :  { %v386_v59 = vsel %vm339_vm4, %v385_v58, 0.0 }
 0x2ef   :  { %387 = vadd.xlane.f32.xlu1 %v386_v59 }
 0x314   :  { %v409_v19 = vpop.xlane.xlu0 %408 }
 0x315   :  { %v415_v21 = vrot.slane %v409_v19, %v1192_v34 }
 0x378   :  { %v388_v2 = vpop.xlane.xlu1 %387 }
 0x379   :  { %v393_v3 = vadd.f32 %v759_v0, %v388_v2 }
 0x37b   :  { %883 = vtanh.f32 %v393_v3 }
 0x388   :  { %v884_v8 = vpop.eup %883 }
 0x389   :  { %401 = vperm.xlu1 %876, %v884_v8   ;;  %v410_v18 = vmul.f32 %v884_v8, %v884_v8 }
 0x38b   :  { %v411_v20 = vsub.f32 1.0, %v410_v18 }
 0x38d   :  { %v416_v22 = vmul.f32 %v415_v21, %v411_v20 }
 0x38f   :  { %v417_v23 = vadd.f32 1.0, %v416_v22 }
 0x391   :  { %v418_v26 = vand.u32 2147483647, %v417_v23 }
 0x393   :  { %v419_v31 = vadd.f32 1e-08, %v418_v26 }
 0x395   :  { %885 = vlog2.f32 %v419_v31 }
 0x3a2   :  { %v886_v39 = vpop.eup %885 }
 0x3a3   :  { %v421_v43 = vmul.f32 0.6931472, %v886_v39 }
 0x3ad   :  { %363 = vadd.xlane.f32.xlu1 %v362_v11 }
 0x3b1   :  { %426 = vadd.xlane.f32.xlu1 %v425_v13 }
 0x404   :  { %v402_v15 = vpop.permute.xlu1 %401 }
 0x405   :  { %v404_v16 = vmul.f32 %v402_v15, %v398_v14 }
 0x407   :  { %v405_v17 = vadd.f32 %v404_v16, %v359_v57 }
 0x409   :  { %682 = vst.msk [vmem:[#allocation4] sm:$0xff] %vm339_vm4, %v405_v17  ;;  %855 = vmatmul.mubr.msk.f32.vlgmr.msra.gmra.mxu1 %vm339_vm4, %v405_v17 }
 0x40a   :  { %865 = vmatprep.mubr.msk.f32.mxu1 %vm978_vm1, %v977_v1 }
 0x436   :  { %v364_v25 = vpop.xlane.xlu1 %363 }
 0x437   :  { %v370_v28 = vrot.slane %v364_v25, %v1192_v34  ;;  %v599_v34 = vld [vmem:[%s1324_s15 + $0x18] sm:$0xff]  ;;  %s980_s15 = smov [#allocation4]  }
 0x438   :  { %858 = vmatpush3.msra.mxu1 %v599_v34  ;;  %s704_s3 = sshll.u32 %s980_s15, 4  ;;  %s705_s3 = int_to_ptr.vmem [resolvable:$true] %s704_s3 }
 0x439   :  { %v371_v29 = vmul.f32 %v370_v28, %v366_v27  ;;  %859 = vmatprep.subr.mxu1 %v977_v1  ;;  %p896_p1 = scmp.lt.s32.totalorder %s705_s3, %s705_s3 }
 0x43a   :  { %v427_v30 = vpop.xlane.xlu1 %426  ;;  %860 = vmatpush3.msra.mxu1 %v598_v41 }
 0x43b   :  { %v372_v32 = vadd.f32 1.0, %v371_v29  ;;  %v428_v33 = vmul.f32 0.5, %v427_v30  ;;  %861 = vmatprep.subr.mxu1 %v977_v1 }
 0x43c   :  { %862 = vmatpush3.msra.mxu1 %v597_v44 }
 0x43d   :  { %v373_v35 = vand.u32 2147483647, %v372_v32  ;;  %686 = vst.msk [vmem:[%s1330_s21] sm:$0xff] %vm685_vm7, %v428_v33  ;;  %863 = vmatprep.subr.mxu1 %v977_v1 }
 0x43e   :  { %864 = vmatpush3.msra.mxu1 %v596_v46 }
 0x43f   :  { %v374_v36 = vadd.f32 1e-08, %v373_v35 }
 0x441   :  { %887 = vlog2.f32 %v374_v36 }
 0x44e   :  { %v888_v40 = vpop.eup %887 }
 0x44f   :  { %v376_v42 = vmul.f32 0.6931472, %v888_v40 }
 0x451   :  { %v422_v45 = vadd.f32 %v421_v43, %v376_v42 }
 0x453   :  { %687 = vst.msk [vmem:[%s1331_s22] sm:$0xff] %vm685_vm7, %v422_v45  ;;  %s891_s22 = scalar_lea.vmem %s705_s3, 128 }
 0x454   :  { %p892_p0 = scmp.ne.s32.totalorder %s705_s3, %s891_s22  ;;  %p897_p2 = scmp.lt.s32.totalorder %s891_s22, %s891_s22 }
 0x456   :  { %p898_p3 = por %p897_p2, %p896_p1 }
 0x458   :  { %p899_p4 = pnand %p898_p3, %p892_p0 }
 0x4c9   :  { %v583_v47 = vpop.f32.mrf.mxu1 }
 0x4ca   :  { %v584_v49 = vadd.f32 %v583_v47, %v510_v37 }
 0x4cb   :  { %v856_v50 = vpop.f32.mrf.mxu1 }
 0x4cc   :  { %v594_v51 = vadd.f32 %v763_v48, %v584_v49 }
 0x4ce   :  { %889 = vtanh.f32 %v594_v51 }
 0x4db   :  { %v890_v52 = vpop.eup %889 }
 0x4dc   :  { %866 = vmatmul.mubr.msk.f32.vlgmr.msra.gmra.mxu1 %vm170_vm3, %v890_v52 }
 0x4dd   :  { %902 = shalt.err (!%p899_p4)
}
 0x4de   :  { %707 = dma.vmem_to_hbm [thread:$0]  %s705_s3, 128, %s1327_s18, [#allocation5]  }
 0x4df   :  { %s981_s14 = smov [#allocation6]   ;;  %s982_s0 = smov [#allocation7]  }
 0x4e0   :  { %s714_s4 = sshll.u32 %s981_s14, 4  ;;  %s724_s23 = sshll.u32 %s982_s0, 4  ;;  %s715_s4 = int_to_ptr.vmem [resolvable:$true] %s714_s4  ;;  %s725_s23 = int_to_ptr.vmem [resolvable:$true] %s724_s23 }
 0x4e1   :  { %s911_s29 = scalar_lea.vmem %s715_s4, 128  ;;  %p916_p6 = scmp.lt.s32.totalorder %s715_s4, %s715_s4 }
 0x4e2   :  { %p912_p5 = scmp.ne.s32.totalorder %s715_s4, %s911_s29  ;;  %p917_p7 = scmp.lt.s32.totalorder %s911_s29, %s911_s29 }
 0x4e4   :  { %p918_p8 = por %p917_p7, %p916_p6 }
 0x4e6   :  { %p919_p9 = pnand %p918_p8, %p912_p5 }
 0x4e8   :  { %922 = shalt.err (!%p919_p9)
}
 0x4e9   :  { %717 = dma.vmem_to_hbm [thread:$0]  %s715_s4, 128, %s1328_s19, [#allocation5]  }
 0x4ea   :  { %s931_s12 = scalar_lea.vmem %s725_s23, 128  ;;  %p936_p11 = scmp.lt.s32.totalorder %s725_s23, %s725_s23 }
 0x4eb   :  { %p932_p10 = scmp.ne.s32.totalorder %s725_s23, %s931_s12  ;;  %p937_p12 = scmp.lt.s32.totalorder %s931_s12, %s931_s12 }
 0x4ed   :  { %p938_p13 = por %p937_p12, %p936_p11 }
 0x4ef   :  { %p939_p0 = pnand %p938_p13, %p932_p10 }
 0x4f1   :  { %942 = shalt.err (!%p939_p0)
}
 0x4f2   :  { %727 = dma.vmem_to_hbm [thread:$0]  %s725_s23, 128, %s1329_s20, [#allocation8]   ;;  %v764_v1 = vld [vmem:[%s1325_s16] ss:$0 sm:$0xff]  ;;  %vm680_vm8 = vcmask 64512  }
 0x4f3   :  { %s983_s24 = smov [#allocation2]  }
 0x4f4   :  { %s694_s6 = sshll.u32 %s983_s24, 4  ;;  %s695_s6 = int_to_ptr.vmem [resolvable:$true] %s694_s6 }
 0x4f5   :  { %s951_s19 = scalar_lea.vmem %s695_s6, 128  ;;  %p956_p2 = scmp.lt.s32.totalorder %s695_s6, %s695_s6 }
 0x4f6   :  { %p952_p1 = scmp.ne.s32.totalorder %s695_s6, %s951_s19  ;;  %p957_p3 = scmp.lt.s32.totalorder %s951_s19, %s951_s19 }
 0x4f8   :  { %p958_p4 = por %p957_p3, %p956_p2 }
 0x4fa   :  { %p959_p5 = pnand %p958_p4, %p952_p1 }
 0x59c   :  { %v676_v53 = vpop.f32.mrf.mxu1 }
 0x59d   :  { %v677_v54 = vadd.f32 %v764_v1, %v676_v53 }
 0x59e   :  { %v867_v55 = vpop.f32.mrf.mxu1 }
 0x59f   :  { %681 = vst.msk [vmem:[#allocation2] sm:$0xff] %vm680_vm8, %v677_v54 }
 0x5a0   :  { %962 = shalt.err (!%p959_p5)
}
 0x5a1   :  { %697 = dma.vmem_to_hbm [thread:$0]  %s695_s6, 128, %s1326_s17, [#allocation3]  }
 0x5a2   :  { %971 = dma.done.wait [#allocation3], 128  }
 0x5a3   :  { %972 = vsyncadd [#allocation3], 4294967168 }
 0x5a4   :  { %973 = dma.done.wait [#allocation5], 256  }
 0x5a5   :  { %974 = vsyncadd [#allocation5], 4294967040 }
 0x5a6   :  { %975 = dma.done.wait [#allocation8], 128  }
 0x5a7   :  { %976 = vsyncadd [#allocation8], 4294967168 }
 0x5a8   :  { %748 = vsyncpa [#allocation3], 1 }
 0x5a9   :  { %749 = vsyncpa [#allocation5], 1 }
 0x5aa   :  { %750 = vsyncpa [#allocation8], 1 }

</bundles_post_ra>
